<compile_context>
chip_gen: v7x
topology: tpu7x:2x2x1
jax: 0.10.0
libtpu: 0.0.40
codegen_flags: <defaults>
</compile_context>

<pallas_src>
import jax
import jax.numpy as jnp
from jax import lax
from jax.experimental import pallas as pl
from jax.experimental.pallas import tpu as pltpu


# ----------------------------------------------------------------------------
# Helpers: generation-aware tile sizing
# ----------------------------------------------------------------------------
def _round_up(x, m):
    return ((x + m - 1) // m) * m


def _vmem_capacity_bytes():
    try:
        return int(pltpu.get_tpu_info().vmem_capacity_bytes)
    except Exception:
        return 64 << 20  # conservative default (v7x per-TensorCore VMEM)


def _pick_batch_tile(D, itemsize_L, with_L):
    """Largest batch tile whose double-buffered working set fits comfortably in VMEM."""
    budget = int(_vmem_capacity_bytes() * 0.40)  # headroom for out bufs / scratch
    per_row = 2 * 4 * D * 4                      # 2x (mu, logvar, eps, out) f32
    if with_L:
        per_row += 2 * D * D * itemsize_L        # 2x L block row (dominant term)
    tb = budget // max(per_row, 1)
    tb = (tb // 8) * 8                           # sublane-aligned
    return int(max(8, min(512, tb)))


def _vmem_limit_bytes(tb, D, with_L, itemsize_L):
    needed = 2 * 4 * tb * D * 4                  # double-buffered vectors (f32)
    if with_L:
        needed += 2 * tb * D * D * itemsize_L    # double-buffered L
    needed += 4 << 20                            # slack for compiler temporaries
    cap = int(_vmem_capacity_bytes() * 0.9)
    return int(min(max(needed, 32 << 20), cap))


def _pad_batch(x, padded_b):
    b = x.shape[0]
    if padded_b == b:
        return x
    return jnp.pad(x, [(0, padded_b - b)] + [(0, 0)] * (x.ndim - 1))


# ----------------------------------------------------------------------------
# Kernel 1: reparameterize WITHOUT the correlation matrix L
#   out = mu + eps * exp(0.5 * logvar)
# ----------------------------------------------------------------------------
def _reparam_diag_kernel(mu_ref, logvar_ref, eps_ref, o_ref):
    std = jnp.exp(0.5 * logvar_ref[...])
    o_ref[...] = mu_ref[...] + eps_ref[...] * std


# ----------------------------------------------------------------------------
# Kernel 2: reparameterize WITH L
#   out = mu + batched_matvec(L, eps) + exp(0.5 * logvar) * eps
# ----------------------------------------------------------------------------
def _reparam_full_kernel(mu_ref, logvar_ref, eps_ref, L_ref, o_ref):
    std = jnp.exp(0.5 * logvar_ref[...])
    eps = eps_ref[...]
    # (TB, D, D) x (TB, D) -> (TB, D)   batched mat-vec on the MXU, f32 accumulate.
    # (Kernel is HBM-bound, so the 1-wide MXU result tile is irrelevant to perf;
    #  pass precision=lax.Precision.HIGHEST if exact f32 products are required.)
    Lv = lax.dot_general(
        L_ref[...], eps.astype(L_ref.dtype),
        dimension_numbers=(((2,), (1,)), ((0,), (0,))),
        preferred_element_type=jnp.float32,
    )
    o_ref[...] = mu_ref[...] + Lv + std * eps


# ----------------------------------------------------------------------------
# Wrappers
# ----------------------------------------------------------------------------
def reparameterize_diag(mu, logvar, eps, *, tile_b=None):
    B, D = mu.shape
    tb = tile_b if tile_b is not None else _pick_batch_tile(D, 4, with_L=False)
    tb = min(tb, _round_up(B, 8))
    pb = _round_up(B, tb)
    vec_spec = pl.BlockSpec((tb, D), lambda i: (i, 0))
    out = pl.pallas_call(
        _reparam_diag_kernel,
        out_shape=jax.ShapeDtypeStruct((pb, D), jnp.float32),
        grid=(pl.cdiv(pb, tb),),
        in_specs=[vec_spec, vec_spec, vec_spec],
        out_specs=vec_spec,
        compiler_params=pltpu.CompilerParams(
            dimension_semantics=("parallel",),
            vmem_limit_bytes=_vmem_limit_bytes(tb, D, with_L=False, itemsize_L=4),
        ),
    )(_pad_batch(mu, pb), _pad_batch(logvar, pb), _pad_batch(eps, pb))
    return out[:B] if pb != B else out


def reparameterize_full(mu, logvar, eps, L, *, tile_b=None, cast_L_to_bf16=False):
    B, D = mu.shape
    if cast_L_to_bf16:
        # Halves the dominant HBM traffic (L is B*D*D bytes); slight numerics cost.
        L = L.astype(jnp.bfloat16)
    itemsize_L = jnp.dtype(L.dtype).itemsize
    tb = tile_b if tile_b is not None else _pick_batch_tile(D, itemsize_L, with_L=True)
    tb = min(tb, _round_up(B, 8))
    pb = _round_up(B, tb)
    vec_spec = pl.BlockSpec((tb, D), lambda i: (i, 0))
    mat_spec = pl.BlockSpec((tb, D, D), lambda i: (i, 0, 0))
    out = pl.pallas_call(
        _reparam_full_kernel,
        out_shape=jax.ShapeDtypeStruct((pb, D), jnp.float32),
        grid=(pl.cdiv(pb, tb),),
        in_specs=[vec_spec, vec_spec, vec_spec, mat_spec],
        out_specs=vec_spec,
        compiler_params=pltpu.CompilerParams(
            dimension_semantics=("parallel",),
            vmem_limit_bytes=_vmem_limit_bytes(tb, D, with_L=True, itemsize_L=itemsize_L),
        ),
    )(_pad_batch(mu, pb), _pad_batch(logvar, pb), _pad_batch(eps, pb), _pad_batch(L, pb))
    return out[:B] if pb != B else out


def vae_reparameterize(mu, logvar, eps, L=None, *, tile_b=None, cast_L_to_bf16=False):
    """Pallas analogue of VAE.reparameterize.

    mu, logvar, eps : (B, D) float32
    L               : optional (B, D, D) float32 (zero leading dim == "empty" as in torch)
    """
    if mu.shape[0] == 0:
        # Mirrors `torch.FloatTensor([])` (shape (0,)) returned by the PyTorch module.
        return jnp.zeros((0,), dtype=jnp.float32)
    if L is None or L.shape[0] == 0:
        # Trace-time dispatch, mirroring the torch `len(L) == 0` check.
        return reparameterize_diag(mu, logvar, eps, tile_b=tile_b)
    return reparameterize_full(mu, logvar, eps, L, tile_b=tile_b,
                               cast_L_to_bf16=cast_L_to_bf16)


# TODO(synk): encode/decode/forward are abstract stubs in the PyTorch module
# (they return None); there is nothing concrete to translate for them.
# TODO(synk): the diag path could generate eps in-kernel (pltpu.prng_seed +
# pltpu.prng_random_bits) to drop one (B, D) HBM read; kept as an explicit
# input here to mirror torch.randn_like deterministically in the test.


if __name__ == "__main__":
    B, D = 24, 128   # small, TPU tile-aligned (sublane=8, lane=128)
    TB = 8           # small batch tile so the demo exercises the multi-step grid

    key = jax.random.PRNGKey(0)
    k_mu, k_lv, k_eps, k_L = jax.random.split(key, 4)

    mu = jax.random.normal(k_mu, (B, D), dtype=jnp.float32)
    logvar = 0.1 * jax.random.normal(k_lv, (B, D), dtype=jnp.float32)
    eps = jax.random.normal(k_eps, (B, D), dtype=jnp.float32)
    L = 0.01 * jax.random.normal(k_L, (B, D, D), dtype=jnp.float32)

    # --- branch 1: no L ------------------------------------------------------
    out_diag = jax.block_until_ready(vae_reparameterize(mu, logvar, eps, tile_b=TB))
    ref_diag = mu + eps * jnp.exp(0.5 * logvar)
    assert out_diag.shape == (B, D)
    assert jnp.allclose(out_diag, ref_diag, atol=1e-5, rtol=1e-5)

    # --- branch 2: with L (explicit small tile -> grid of 3 steps) ------------
    out_full = jax.block_until_ready(vae_reparameterize(mu, logvar, eps, L, tile_b=TB))
    ref_full = mu + jnp.einsum("bij,bj->bi", L, eps) + jnp.exp(0.5 * logvar) * eps
    assert out_full.shape == (B, D)
    assert jnp.allclose(out_full, ref_full, atol=2e-4, rtol=1e-4)

    # --- branch 2 again with the auto (generation-aware) tile size ------------
    out_auto = jax.block_until_ready(vae_reparameterize(mu, logvar, eps, L))
    assert out_auto.shape == (B, D)
    assert jnp.allclose(out_auto, ref_full, atol=2e-4, rtol=1e-4)

    print("KERNEL_OK")
</pallas_src>

<mosaic_0001>
module attributes {stable_mosaic.version = 11 : i64} {
  func.func @_reparam_diag_kernel(%arg0: i32, %arg1: memref<8x128xf32, #tpu.memory_space<vmem>>, %arg2: memref<8x128xf32, #tpu.memory_space<vmem>>, %arg3: memref<8x128xf32, #tpu.memory_space<vmem>>, %arg4: memref<8x128xf32, #tpu.memory_space<vmem>>) attributes {dimension_semantics = [#tpu.dimension_semantics<parallel>], iteration_bounds = array<i64: 3>, scalar_prefetch = 0 : i64, scratch_operands = 0 : i64, tpu.core_type = #tpu.core_type<tc>, window_params = [{transform_indices = @transform_0, window_bounds = array<i64: 8, 128>}, {transform_indices = @transform_1, window_bounds = array<i64: 8, 128>}, {transform_indices = @transform_2, window_bounds = array<i64: 8, 128>}, {transform_indices = @transform_3, window_bounds = array<i64: 8, 128>}]} {
    %c0 = arith.constant 0 : index
    %c0_0 = arith.constant 0 : index
    %0 = vector.load %arg2[%c0, %c0_0] : memref<8x128xf32, #tpu.memory_space<vmem>>, vector<8x128xf32>
    %cst = arith.constant 5.000000e-01 : f32
    %1 = vector.broadcast %cst : f32 to vector<8x128xf32>
    %2 = arith.mulf %1, %0 : vector<8x128xf32>
    %3 = math.exp %2 : vector<8x128xf32>
    %c0_1 = arith.constant 0 : index
    %c0_2 = arith.constant 0 : index
    %4 = vector.load %arg1[%c0_1, %c0_2] : memref<8x128xf32, #tpu.memory_space<vmem>>, vector<8x128xf32>
    %c0_3 = arith.constant 0 : index
    %c0_4 = arith.constant 0 : index
    %5 = vector.load %arg3[%c0_3, %c0_4] : memref<8x128xf32, #tpu.memory_space<vmem>>, vector<8x128xf32>
    %6 = arith.mulf %5, %3 : vector<8x128xf32>
    %7 = arith.addf %4, %6 : vector<8x128xf32>
    %c0_5 = arith.constant 0 : index
    %c0_6 = arith.constant 0 : index
    %8 = vector.load %arg4[%c0_5, %c0_6] : memref<8x128xf32, #tpu.memory_space<vmem>>, vector<8x128xf32>
    tpu.vector_store %arg4[%c0_5, %c0_6], %7 {strides = array<i32>} : memref<8x128xf32, #tpu.memory_space<vmem>>, vector<8x128xf32>,
    return
  }
  func.func @transform_0(%arg0: i32) -> (i32, i32) {
    %c0_i32 = arith.constant 0 : i32
    %c0_i32_0 = arith.constant 0 : i32
    return %arg0, %c0_i32 : i32, i32
  }
  func.func @transform_1(%arg0: i32) -> (i32, i32) {
    %c0_i32 = arith.constant 0 : i32
    %c0_i32_0 = arith.constant 0 : i32
    return %arg0, %c0_i32 : i32, i32
  }
  func.func @transform_2(%arg0: i32) -> (i32, i32) {
    %c0_i32 = arith.constant 0 : i32
    %c0_i32_0 = arith.constant 0 : i32
    return %arg0, %c0_i32 : i32, i32
  }
  func.func @transform_3(%arg0: i32) -> (i32, i32) {
    %c0_i32 = arith.constant 0 : i32
    %c0_i32_0 = arith.constant 0 : i32
    return %arg0, %c0_i32 : i32, i32
  }
}

</mosaic_0001>

<bundles_post_ra>
// kernel: tpu_custom_call.1
= control target key start
LH: loop header
LB: loop body
LE: loop exit
PB: predicated region body
PF: predicated region fallthrough
CT: control target
= control target key end

     0   :  { %s882_s0 = inlined_call_operand.hbm [shape: f32[24,128], index: 0, kind: input, shape index: {}]   ;;  %s883_s1 = inlined_call_operand.hbm [shape: f32[24,128], index: 1, kind: input, shape index: {}]   ;;  %s884_s2 = inlined_call_operand.hbm [shape: f32[24,128], index: 2, kind: input, shape index: {}]   ;;  %s885_s3 = inlined_call_operand.hbm [shape: f32[24,128], index: 3, kind: output, shape index: {}]  }
   0x1   :  { %890 = sst [smem:[#allocation12_spill]] %s883_s1 }
   0x2   :  { %8 = vsyncpa [#allocation3], 0 }
   0x3   :  { %10 = vsyncpa [#allocation3 + $0x1], 0 }
   0x4   :  { %11 = vsyncpa [#allocation6], 0 }
   0x5   :  { %13 = vsyncpa [#allocation6 + $0x1], 0 }
   0x6   :  { %14 = vsyncpa [#allocation4], 0 }
   0x7   :  { %16 = vsyncpa [#allocation4 + $0x1], 0  ;;  %s655_s12 = smov 0   ;;  %s657_s13 = smov 0  }
   0x8   :  { %s659_s14 = smov 0   ;;  %s661_s15 = smov 0  }
   0x9 LB: > { %s676_s16 = sadd.s32 4294967295, %s629_s15   ;;  %s393_s17 = sadd.s32 4294967294, %s629_s15   ;;  %s629_s15 = sphi %s661_s15, %s908_s15   ;;  %s625_s14 = sphi %s659_s14, %s907_s14   ;;  %s621_s13 = sphi %s657_s13, %s906_s13   ;;  %s617_s12 = sphi %s655_s12, %s905_s12  }
   0xa   : > { %s680_s18 = sadd.s32 1, %s629_s15   ;;  %s29_s19 = sadd.s32 1, %s625_s14 }
   0xb   : > { %s26_s20 = ssub.s32 %s629_s15, %s680_s18  ;;  %p36_p0 = scmp.ne.s32.totalorder %s625_s14, %s621_s13 }
   0xc   : > { %p27_p1 = scmp.eq.s32.totalorder %s26_s20, 0  ;;  %p37_p2 = scmp.eq.s32.totalorder %s629_s15, 0 }
   0xd   : > { %p42_p3 = scmp.ne.s32.totalorder %s621_s13, %s617_s12  ;;  %p43_p4 = scmp.eq.s32.totalorder %s676_s16, 0 }
   0xe   : > { %s692_s21 = scalar_select %p27_p1, %s625_s14, %s29_s19  }
   0xf   : > { %p38_p5 = por %p37_p2, %p36_p0  ;;  %p694_p6 = por %p43_p4, %p42_p3 }
  0x10   : > { %p118_p7 = scmp.eq.s32.totalorder %s676_s16, 2  ;;  %p124_p8 = scmp.eq.s32.totalorder %s393_s17, 2 }
  0x11   : > { %s891_s22 = scalar_select %p694_p6, 1, 0 }
  0x12   : > { %p433_p9 = scmp.lt.s32.totalorder %s629_s15, 3  ;;  %p700_p10 = por %p118_p7, %p36_p0 }
  0x13   : > { %p704_p11 = por %p124_p8, %p42_p3  ;;  %s144_s25 = sand.u32 1, %s625_s14  }
  0x14   : > { %s892_s23 = scalar_select %p700_p10, 1, 0 }
  0x15   : > { %s893_s24 = scalar_select %p704_p11, 1, 0 }
  0x16   : > { %s710_s26 = sshll.u32 %s629_s15, 7  ;;  %s714_s27 = sshll.u32 %s144_s25, 3 }
  0x17   : > { %p716_p12 = pnand %p433_p9, %p38_p5  ;;  %s162_s29 = sand.u32 1, %s629_s15  }
  0x18   : > { %s895_s1 = sld [smem:[#allocation12_spill]]  ;;  %s166_s6 = scalar_lea.vmem [#allocation5], %s714_s27 }
  0x19   : > { %s894_s28 = scalar_select %p716_p12, 1, 0 }
  0x1a   : > { %s173_s7 = sshll.u32 %s166_s6, 4  ;;  %s731_s8 = scalar_lea.sflag [#allocation6], %s162_s29  ;;  %s728_s7 = int_to_ptr.vmem [resolvable:$true] %s173_s7 }
  0x1b   : > { %p737_p1 = pneg %p716_p12 }
  0x1e   : > { %s725_s5 = scalar_lea.hbm %s895_s1, %s710_s26  ;;  %s474_s19 = scalar_lea.hbm %s895_s1, 384 }
  0x1f   : > { %s469_s9 = scalar_lea.hbm %s725_s5, 128  ;;  %p475_p4 = scmp.lt.u32.totalorder %s725_s5, %s895_s1 }
  0x20   : > { %p470_p0 = scmp.ne.s32.totalorder %s725_s5, %s469_s9  ;;  %p476_p5 = scmp.lt.u32.totalorder %s474_s19, %s469_s9 }
  0x21   : > { %p478_p8 = scmp.lt.u32.totalorder %s469_s9, %s725_s5 }
  0x22   : > { %p472_p2 = pnand %p737_p1, %p470_p0  ;;  %p477_p7 = por %p476_p5, %p475_p4 }
  0x24   : > { %p473_p3 = pneg %p472_p2  ;;  %p479_p9 = por %p478_p8, %p477_p7 }
  0x26   : > { %p480_p13 = pnand %p479_p9, %p473_p3 }
  0x28   : > { %483 = shalt.err (!%p480_p13)
}
  0x29   : > { %s484_s29 = scalar_lea.vmem %s728_s7, 128  ;;  %s631_s4 = smov [#allocation5]  }
  0x2a   : > { %p485_p0 = scmp.ne.s32.totalorder %s728_s7, %s484_s29  ;;  %s489_s6 = sshll.u32 %s631_s4, 4  ;;  %s490_s6 = int_to_ptr.vmem [resolvable:$false] %s489_s6 }
  0x2b   : > { %s491_s11 = scalar_lea.vmem %s490_s6, 256  ;;  %p492_p10 = scmp.lt.s32.totalorder %s728_s7, %s490_s6 }
  0x2c   : > { %p487_p2 = pnand %p485_p0, %p737_p1  ;;  %p493_p6 = scmp.lt.s32.totalorder %s491_s11, %s484_s29 }
  0x2e   : > { %p488_p11 = pneg %p487_p2  ;;  %p494_p4 = por %p493_p6, %p492_p10 }
  0x30   : > { %p495_p5 = pnand %p494_p4, %p488_p11 }
  0x32   : > { %498 = shalt.err (!%p495_p5)
}
  0x33   : > { %425 = dma.hbm_to_vmem [thread:$0]  (!%p716_p12), %s725_s5, 128, %s728_s7, %s731_s8  }
  0x34   : > { %p196_p13 = scmp.lt.s32.totalorder %s629_s15, 4  ;;  %s766_s19 = scalar_lea.hbm %s882_s0, %s710_s26 }
  0x35   : > { %p897_p6 = scmp.ge.s32.totalorder %s629_s15, 1  ;;  %s148_s30 = scalar_lea.vmem [#allocation2], %s714_s27 }
  0x36   : > { %s155_s29 = sshll.u32 %s148_s30, 4  ;;  %s145_s5 = scalar_lea.sflag [#allocation3], %s144_s25  ;;  %s156_s29 = int_to_ptr.vmem [resolvable:$true] %s155_s29 }
  0x37   : > { %p770_p10 = pnand %p897_p6, %p196_p13  ;;  %s499_s7 = scalar_lea.hbm %s766_s19, 128 }
  0x38   : > { %p500_p11 = scmp.ne.s32.totalorder %s766_s19, %s499_s7  ;;  %s504_s11 = scalar_lea.hbm %s882_s0, 384 }
  0x39   : > { %s898_s20 = scalar_select %p770_p10, 1, 0 }
  0x3a   : > { %p502_p3 = pnand %p500_p11, %p737_p1  ;;  %p505_p8 = scmp.lt.u32.totalorder %s766_s19, %s882_s0 }
  0x3b   : > { %p506_p9 = scmp.lt.u32.totalorder %s504_s11, %s499_s7  ;;  %p508_p2 = scmp.lt.u32.totalorder %s499_s7, %s766_s19 }
  0x3c   : > { %p503_p7 = pneg %p502_p3 }
  0x3d   : > { %p507_p0 = por %p506_p9, %p505_p8 }
  0x3f   : > { %p509_p4 = por %p508_p2, %p507_p0 }
  0x41   : > { %p510_p5 = pnand %p509_p4, %p503_p7 }
  0x43   : > { %513 = shalt.err (!%p510_p5)
}
  0x44   : > { %s514_s25 = scalar_lea.vmem %s156_s29, 128  ;;  %s632_s30 = smov [#allocation2]  }
  0x45   : > { %p515_p13 = scmp.ne.s32.totalorder %s156_s29, %s514_s25  ;;  %s519_s1 = sshll.u32 %s632_s30, 4  ;;  %s520_s1 = int_to_ptr.vmem [resolvable:$false] %s519_s1 }
  0x46   : > { %s521_s4 = scalar_lea.vmem %s520_s1, 256  ;;  %p522_p3 = scmp.lt.s32.totalorder %s156_s29, %s520_s1 }
  0x47   : > { %p517_p6 = pnand %p515_p13, %p737_p1  ;;  %p523_p10 = scmp.lt.s32.totalorder %s521_s4, %s514_s25 }
  0x49   : > { %p518_p11 = pneg %p517_p6  ;;  %p524_p12 = por %p523_p10, %p522_p3 }
  0x4b   : > { %p525_p8 = pnand %p524_p12, %p518_p11 }
  0x4d   : > { %528 = shalt.err (!%p525_p8)
}
  0x4e   : > { %p899_p9 = scmp.ne.s32.totalorder %s894_s28, 0  ;;  %s798_s11 = scalar_lea.hbm %s884_s2, %s710_s26 }
  0x4f   : > { %s184_s1 = scalar_lea.vmem [#allocation7], %s714_s27  ;;  %s529_s17 = scalar_lea.hbm %s798_s11, 128 }
  0x50   : > { %422 = dma.hbm_to_vmem [thread:$0]  (!%p899_p9), %s766_s19, 128, %s156_s29, %s145_s5  }
  0x51   : > { %s191_s9 = sshll.u32 %s184_s1, 4  ;;  %p530_p12 = scmp.ne.s32.totalorder %s798_s11, %s529_s17  ;;  %s192_s9 = int_to_ptr.vmem [resolvable:$true] %s191_s9 }
  0x52   : > { %s534_s19 = scalar_lea.hbm %s884_s2, 384  ;;  %p535_p0 = scmp.lt.u32.totalorder %s798_s11, %s884_s2 }
  0x53   : > { %p532_p10 = pnand %p530_p12, %p737_p1  ;;  %p536_p2 = scmp.lt.u32.totalorder %s534_s19, %s529_s17 }
  0x54   : > { %p538_p5 = scmp.lt.u32.totalorder %s529_s17, %s798_s11 }
  0x55   : > { %p533_p7 = pneg %p532_p10  ;;  %p537_p4 = por %p536_p2, %p535_p0 }
  0x57   : > { %p539_p13 = por %p538_p5, %p537_p4 }
  0x59   : > { %p540_p6 = pnand %p539_p13, %p533_p7 }
  0x5b   : > { %543 = shalt.err (!%p540_p6)
}
  0x5c   : > { %s544_s26 = scalar_lea.vmem %s192_s9, 128  ;;  %s633_s27 = smov [#allocation7]  }
  0x5d   : > { %p545_p11 = scmp.ne.s32.totalorder %s192_s9, %s544_s26  ;;  %s549_s4 = sshll.u32 %s633_s27, 4  ;;  %s550_s4 = int_to_ptr.vmem [resolvable:$false] %s549_s4 }
  0x5e   : > { %s551_s7 = scalar_lea.vmem %s550_s4, 256  ;;  %p552_p12 = scmp.lt.s32.totalorder %s192_s9, %s550_s4 }
  0x5f   : > { %p547_p3 = pnand %p545_p11, %p737_p1  ;;  %p553_p10 = scmp.lt.s32.totalorder %s551_s7, %s544_s26 }
  0x61   : > { %p548_p8 = pneg %p547_p3  ;;  %p554_p9 = por %p553_p10, %p552_p12 }
  0x63   : > { %p555_p0 = pnand %p554_p9, %p548_p8 }
  0x65   : > { %558 = shalt.err (!%p555_p0)
}
  0x66   : > { %p900_p2 = scmp.ne.s32.totalorder %s894_s28, 0  ;;  %p901_p7 = scmp.ne.s32.totalorder %s898_s20, 0 }
  0x67   : > { %s822_s10 = sand.u32 (!%p901_p7), 1, %s621_s13   ;;  %p902_p1 = scmp.ne.s32.totalorder (!%p901_p7), %s891_s22, 0 }
  0x68   : > { %428 = dma.hbm_to_vmem [thread:$0]  (!%p900_p2), %s798_s11, 128, %s192_s9, %s731_s8  }
  0x69   : > { %200 = sbr.rel (%p901_p7) target bundleno = 150 (0x96), region = 32  ;;  %s403_s6 = sshll.u32 (!%p901_p7), %s822_s10, 3 }
  0x6a   : > { %s203_s1 = scalar_lea.sflag (!%p901_p7), [#allocation3], %s822_s10  ;;  %s206_s17 = scalar_lea.vmem (!%p901_p7), [#allocation2], %s403_s6 }
  0x70   : > { %604 = dma.done.wait (%p902_p1), %s203_s1, 128  }
  0x71   : > { %606 = vsyncadd (%p902_p1), %s203_s1, 4294967168  ;;  %s211_s28 = sand.u32 1, %s676_s16   ;;  %s215_s20 = scalar_lea.vmem [#allocation5], %s403_s6 }
  0x72   : > { %s212_s8 = scalar_lea.sflag [#allocation6], %s211_s28 }
  0x73   : > { %608 = dma.done.wait (%p902_p1), %s212_s8, 256  }
  0x74   : > { %610 = vsyncadd (%p902_p1), %s212_s8, 4294967040  ;;  %v257_v0 = vld [vmem:[%s215_s20] sm:$0xff]  ;;  %s224_s11 = scalar_lea.vmem [#allocation7], %s403_s6  ;;  %v261_v5 = vld [vmem:[%s206_s17] sm:$0xff]  ;;  %s256_s9 = scalar_lea.vmem [#allocation8], %s403_s6 }
  0x75   : > { %v258_v1 = vmul.f32 0.5, %v257_v0  ;;  %v262_v3 = vld [vmem:[%s224_s11] sm:$0xff]  ;;  %s280_s25 = sshll.u32 %s256_s9, 4  ;;  %s408_s30 = sshll.u32 %s676_s16, 7  ;;  %s836_s25 = int_to_ptr.vmem [resolvable:$true] %s280_s25 }
  0x76   : > { %s841_s29 = scalar_lea.hbm %s885_s3, %s408_s30  ;;  %s267_s5 = scalar_lea.sflag [#allocation4], %s822_s10 }
  0x77   : > { %v259_v2 = vmul.f32 1.442695, %v258_v1  ;;  %s559_s26 = scalar_lea.vmem %s836_s25, 128  ;;  %p903_p4 = scmp.ne.s32.totalorder %s892_s23, 0 }
  0x78   : > { %p560_p9 = scmp.ne.s32.totalorder %s836_s25, %s559_s26  ;;  %s634_s16 = smov [#allocation8]  }
  0x79   : > { %467 = vpow2.f32 %v259_v2  ;;  %s563_s27 = sshll.u32 %s634_s16, 4  ;;  %s564_s27 = int_to_ptr.vmem [resolvable:$false] %s563_s27 }
  0x7a   : > { %p561_p5 = pnand %p560_p9, %p903_p4  ;;  %s565_s4 = scalar_lea.vmem %s564_s27, 256 }
  0x7b   : > { %p566_p6 = scmp.lt.s32.totalorder %s836_s25, %s564_s27  ;;  %p567_p11 = scmp.lt.s32.totalorder %s565_s4, %s559_s26 }
  0x7c   : > { %p562_p13 = pneg %p561_p5 }
  0x7d   : > { %p568_p3 = por %p567_p11, %p566_p6 }
  0x7f   : > { %p569_p8 = pnand %p568_p3, %p562_p13 }
  0x83   : > { %v468_v4 = vpop.eup %467 }
  0x84   : > { %v263_v6 = vmul.f32 %v468_v4, %v262_v3 }
  0x86   : > { %v264_v7 = vadd.f32 %v263_v6, %v261_v5 }
  0x88   : > { %265 = vst [vmem:[%s256_s9] sm:$0xff] %v264_v7 }
  0x89   : > { %572 = shalt.err (!%p569_p8)
}
  0x8a   : > { %s573_s7 = scalar_lea.hbm %s841_s29, 128  ;;  %s577_s1 = scalar_lea.hbm %s885_s3, 384 }
  0x8b   : > { %p574_p12 = scmp.ne.s32.totalorder %s841_s29, %s573_s7  ;;  %p578_p2 = scmp.lt.u32.totalorder %s841_s29, %s885_s3 }
  0x8c   : > { %p579_p7 = scmp.lt.u32.totalorder %s577_s1, %s573_s7  ;;  %p581_p9 = scmp.lt.u32.totalorder %s573_s7, %s841_s29 }
  0x8d   : > { %p575_p10 = pnand %p574_p12, %p903_p4 }
  0x8e   : > { %p580_p1 = por %p579_p7, %p578_p2 }
  0x8f   : > { %p576_p0 = pneg %p575_p10 }
  0x90   : > { %p582_p5 = por %p581_p9, %p580_p1 }
  0x92   : > { %p583_p13 = pnand %p582_p5, %p576_p0 }
  0x94   : > { %586 = shalt.err (!%p583_p13)
}
  0x95   : > { %417 = dma.vmem_to_hbm [thread:$0]  (%p903_p4), %s836_s25, 128, %s841_s29, %s267_s5  }
  0x96 PF: > { %p434_p6 = scmp.ge.s32.totalorder %s629_s15, 2  ;;  %s292_s8 = sand.u32 1, %s617_s12  }
  0x97   : > { %p904_p11 = scmp.ne.s32.totalorder %s893_s24, 0  ;;  %s293_s20 = scalar_lea.sflag [#allocation4], %s292_s8 }
  0x99   : > { %p430_p3 = pnand %p434_p6, %p904_p11 }
  0x9b   : > { %612 = dma.done.wait (!%p430_p3), %s293_s20, 128  }
  0x9c   : > { %614 = vsyncadd (!%p430_p3), %s293_s20, 4294967168  ;;  %p19_p8 = scmp.ge.s32.totalorder %s680_s18, 5   ;;  %s905_s12 = smov %s621_s13 }
  0x9d   : > { %s906_s13 = smov %s625_s14  ;;  %s907_s14 = smov %s692_s21 }
  0x9e   : > { %s908_s15 = smov %s680_s18  ;;  %21 = sbr.rel (!%p19_p8) target bundleno = 9 (0x9), region = 101 }
  0xa5   :  { %298 = vsyncpa [#allocation3], 1 }
  0xa6   :  { %300 = vsyncpa [#allocation3 + $0x1], 1 }
  0xa7   :  { %301 = vsyncpa [#allocation6], 1 }
  0xa8   :  { %303 = vsyncpa [#allocation6 + $0x1], 1 }
  0xa9   :  { %304 = vsyncpa [#allocation4], 1 }
  0xaa   :  { %306 = vsyncpa [#allocation4 + $0x1], 1 }

</bundles_post_ra>
